<compile_context>
chip_gen: v7x
topology: tpu7x:2x2x1
jax: 0.10.0
libtpu: 0.0.40
codegen_flags: <defaults>
</compile_context>

<pallas_src>
import functools
import numpy as np

import jax
import jax.numpy as jnp
from jax.experimental import pallas as pl
from jax.experimental.pallas import tpu as pltpu


def _round_up(x, m):
    return (x + m - 1) // m * m


def _layer_norm_kernel(x_ref, w_ref, b_ref, o_ref, *, eps, true_f):
    # x_ref: (TN, Fp) row tile; w_ref/b_ref: (1, Fp), VMEM-resident across steps.
    x = x_ref[...].astype(jnp.float32)
    inv_f = jnp.float32(1.0 / true_f)

    # One traversal: sum and sum-of-squares (zero-padded lanes contribute 0).
    sum_x = jnp.sum(x, axis=-1, keepdims=True)
    sum_x2 = jnp.sum(x * x, axis=-1, keepdims=True)
    mean = sum_x * inv_f
    var = jnp.maximum(sum_x2 * inv_f - mean * mean, 0.0)  # biased var, as in F.layer_norm
    inv = jax.lax.rsqrt(var + eps)

    w = w_ref[...].astype(jnp.float32)
    b = b_ref[...].astype(jnp.float32)
    o_ref[...] = ((x - mean) * inv * w + b).astype(o_ref.dtype)


def layer_norm(x, weight, bias, eps=1e-5):
    """LayerNorm over all non-batch dims of `x` (PyTorch F.layer_norm semantics)."""
    orig_shape = x.shape
    N = orig_shape[0]
    F = int(np.prod(orig_shape[1:]))

    x2 = x.reshape(N, F)
    w2 = weight.reshape(1, F)
    b2 = bias.reshape(1, F)

    # Lane-dense feature dim: pad to a multiple of 128. Zero padding needs no
    # in-kernel mask because the reduction divisor is the true F.
    Fp = _round_up(F, 128)
    if Fp != F:
        x2 = jnp.pad(x2, ((0, 0), (0, Fp - F)))
        w2 = jnp.pad(w2, ((0, 0), (0, Fp - F)))
        b2 = jnp.pad(b2, ((0, 0), (0, Fp - F)))

    # Row-tile size: multiple of 8 sublanes, capped so that the double-buffered
    # input + output blocks (~4 * TN*Fp*4 B) stay comfortably under the 32 MiB
    # default scoped VMEM on every generation (v7x has only 64 MiB physical).
    bytes_per_row = Fp * 4
    budget_per_block = 6 * 1024 * 1024
    tn = max(8, min(512, (budget_per_block // bytes_per_row) // 8 * 8))
    tn = min(tn, _round_up(N, 8))
    # TODO(synk): for very wide F where even a TN=8 whole-row block would blow
    # VMEM, add a blocked-F path (reduction grid axis + pl.when init/finalize).

    Np = _round_up(N, tn)
    if Np != N:
        x2 = jnp.pad(x2, ((0, Np - N), (0, 0)))

    kernel = functools.partial(_layer_norm_kernel, eps=float(eps), true_f=float(F))

    out = pl.pallas_call(
        kernel,
        out_shape=jax.ShapeDtypeStruct((Np, Fp), x.dtype),
        grid=(Np // tn,),
        in_specs=[
            pl.BlockSpec((tn, Fp), lambda i: (i, 0)),
            pl.BlockSpec((1, Fp), lambda i: (0, 0)),
            pl.BlockSpec((1, Fp), lambda i: (0, 0)),
        ],
        out_specs=pl.BlockSpec((tn, Fp), lambda i: (i, 0)),
        compiler_params=pltpu.CompilerParams(
            dimension_semantics=("parallel",)),
    )(x2, w2, b2)

    if Np != N or Fp != F:
        out = out[:N, :F]
    return out.reshape(orig_shape)


if __name__ == "__main__":
    key = jax.random.PRNGKey(0)

    # Input consistent with an NCHW conv feature map: (batch, channels, H, W)
    N, C, H, W = 2, 4, 16, 16
    x = jax.random.normal(key, (N, C, H, W), dtype=jnp.float32)

    # Parameters per the module's __init__/reset_parameters:
    # weight = ones(normalized_shape), bias = zeros(normalized_shape),
    # with normalized_shape = input.shape[1:] = (C, H, W).
    weight = jnp.ones((C, H, W), dtype=jnp.float32)
    bias = jnp.zeros((C, H, W), dtype=jnp.float32)
    eps = 1e-5

    out = layer_norm(x, weight, bias, eps)
    out = jax.block_until_ready(out)

    # Reference check in plain JAX (same semantics as F.layer_norm over dims 1..3).
    xf = x.reshape(N, -1)
    mean = jnp.mean(xf, axis=-1, keepdims=True)
    var = jnp.mean((xf - mean) ** 2, axis=-1, keepdims=True)
    ref = ((xf - mean) / jnp.sqrt(var + eps)).reshape(x.shape) * weight[None] + bias[None]

    assert out.shape == x.shape and out.dtype == x.dtype
    np.testing.assert_allclose(np.asarray(out), np.asarray(ref), rtol=1e-5, atol=1e-5)

    print("KERNEL_OK")
</pallas_src>

<mosaic_0001>
module attributes {stable_mosaic.version = 11 : i64} {
  func.func @_layer_norm_kernel(%arg0: i32, %arg1: memref<8x1024xf32, #tpu.memory_space<vmem>>, %arg2: memref<1x1024xf32, #tpu.memory_space<vmem>>, %arg3: memref<1x1024xf32, #tpu.memory_space<vmem>>, %arg4: memref<8x1024xf32, #tpu.memory_space<vmem>>) attributes {dimension_semantics = [#tpu.dimension_semantics<parallel>], iteration_bounds = array<i64: 1>, scalar_prefetch = 0 : i64, scratch_operands = 0 : i64, tpu.core_type = #tpu.core_type<tc>, window_params = [{transform_indices = @transform_0, window_bounds = array<i64: 8, 1024>}, {pipeline_mode = #tpu.pipeline_mode<synchronous>, transform_indices = @transform_1, window_bounds = array<i64: 1, 1024>}, {pipeline_mode = #tpu.pipeline_mode<synchronous>, transform_indices = @transform_2, window_bounds = array<i64: 1, 1024>}, {transform_indices = @transform_3, window_bounds = array<i64: 8, 1024>}]} {
    %c0 = arith.constant 0 : index
    %c0_0 = arith.constant 0 : index
    %0 = vector.load %arg1[%c0, %c0_0] : memref<8x1024xf32, #tpu.memory_space<vmem>>, vector<8x1024xf32>
    %cst = arith.constant dense<0.000000e+00> : vector<8xf32>
    %1 = vector.multi_reduction <add>, %0, %cst [1] : vector<8x1024xf32> to vector<8xf32>
    %2 = vector.shape_cast %1 : vector<8xf32> to vector<8x1xf32>
    %3 = arith.mulf %0, %0 : vector<8x1024xf32>
    %cst_1 = arith.constant dense<0.000000e+00> : vector<8xf32>
    %4 = vector.multi_reduction <add>, %3, %cst_1 [1] : vector<8x1024xf32> to vector<8xf32>
    %5 = vector.shape_cast %4 : vector<8xf32> to vector<8x1xf32>
    %cst_2 = arith.constant 9.765625E-4 : f32
    %6 = vector.broadcast %cst_2 : f32 to vector<8x1xf32>
    %7 = arith.mulf %2, %6 : vector<8x1xf32>
    %cst_3 = arith.constant 9.765625E-4 : f32
    %8 = vector.broadcast %cst_3 : f32 to vector<8x1xf32>
    %9 = arith.mulf %5, %8 : vector<8x1xf32>
    %10 = arith.mulf %7, %7 : vector<8x1xf32>
    %11 = arith.subf %9, %10 : vector<8x1xf32>
    %cst_4 = arith.constant 0.000000e+00 : f32
    %12 = vector.broadcast %cst_4 : f32 to vector<8x1xf32>
    %13 = arith.maximumf %11, %12 : vector<8x1xf32>
    %cst_5 = arith.constant 9.99999974E-6 : f32
    %14 = vector.broadcast %cst_5 : f32 to vector<8x1xf32>
    %15 = arith.addf %13, %14 : vector<8x1xf32>
    %16 = math.rsqrt %15 : vector<8x1xf32>
    %c0_6 = arith.constant 0 : index
    %c0_7 = arith.constant 0 : index
    %17 = vector.load %arg2[%c0_6, %c0_7] : memref<1x1024xf32, #tpu.memory_space<vmem>>, vector<1x1024xf32>
    %c0_8 = arith.constant 0 : index
    %c0_9 = arith.constant 0 : index
    %18 = vector.load %arg3[%c0_8, %c0_9] : memref<1x1024xf32, #tpu.memory_space<vmem>>, vector<1x1024xf32>
    %19 = vector.broadcast %7 : vector<8x1xf32> to vector<8x1024xf32>
    %20 = arith.subf %0, %19 : vector<8x1024xf32>
    %21 = vector.broadcast %16 : vector<8x1xf32> to vector<8x1024xf32>
    %22 = arith.mulf %20, %21 : vector<8x1024xf32>
    %23 = vector.broadcast %17 : vector<1x1024xf32> to vector<8x1024xf32>
    %24 = arith.mulf %22, %23 : vector<8x1024xf32>
    %25 = vector.broadcast %18 : vector<1x1024xf32> to vector<8x1024xf32>
    %26 = arith.addf %24, %25 : vector<8x1024xf32>
    %c0_10 = arith.constant 0 : index
    %c0_11 = arith.constant 0 : index
    %27 = vector.load %arg4[%c0_10, %c0_11] : memref<8x1024xf32, #tpu.memory_space<vmem>>, vector<8x1024xf32>
    tpu.vector_store %arg4[%c0_10, %c0_11], %26 {strides = array<i32>} : memref<8x1024xf32, #tpu.memory_space<vmem>>, vector<8x1024xf32>,
    return
  }
  func.func @transform_0(%arg0: i32) -> (i32, i32) {
    %c0_i32 = arith.constant 0 : i32
    %c0_i32_0 = arith.constant 0 : i32
    return %arg0, %c0_i32 : i32, i32
  }
  func.func @transform_1(%arg0: i32) -> (i32, i32) {
    %c0_i32 = arith.constant 0 : i32
    %c0_i32_0 = arith.constant 0 : i32
    %c0_i32_1 = arith.constant 0 : i32
    return %c0_i32, %c0_i32_0 : i32, i32
  }
  func.func @transform_2(%arg0: i32) -> (i32, i32) {
    %c0_i32 = arith.constant 0 : i32
    %c0_i32_0 = arith.constant 0 : i32
    %c0_i32_1 = arith.constant 0 : i32
    return %c0_i32, %c0_i32_0 : i32, i32
  }
  func.func @transform_3(%arg0: i32) -> (i32, i32) {
    %c0_i32 = arith.constant 0 : i32
    %c0_i32_0 = arith.constant 0 : i32
    return %arg0, %c0_i32 : i32, i32
  }
}

</mosaic_0001>

<bundles_post_ra>
// kernel: tpu_custom_call.1
= control target key start
LH: loop header
LB: loop body
LE: loop exit
PB: predicated region body
PF: predicated region fallthrough
CT: control target
= control target key end

     0   :  { %8 = vsyncpa [#allocation3], 0  ;;  %s451_s0 = inlined_call_operand.hbm [shape: f32[8,1024], index: 0, kind: input, shape index: {}]   ;;  %s452_s1 = inlined_call_operand.hbm [shape: f32[1,1024], index: 1, kind: input, shape index: {}]   ;;  %s453_s2 = inlined_call_operand.hbm [shape: f32[1,1024], index: 2, kind: input, shape index: {}]   ;;  %s454_s3 = inlined_call_operand.hbm [shape: f32[8,1024], index: 3, kind: output, shape index: {}]  }
   0x1   :  { %9 = vsyncpa [#allocation6], 0 }
   0x2   :  { %10 = vsyncpa [#allocation4], 0  ;;  %s331_s12 = smov [#allocation5]   ;;  %s332_s14 = smov [#allocation2]  }
   0x3   :  { %s27_s13 = sshll.u32 %s331_s12, 4  ;;  %s17_s15 = sshll.u32 %s332_s14, 4  ;;  %s28_s13 = int_to_ptr.vmem [resolvable:$true] %s27_s13  ;;  %s18_s15 = int_to_ptr.vmem [resolvable:$true] %s17_s15 }
   0x4   :  { %s237_s18 = scalar_lea.hbm %s452_s1, 128 }
   0x5   :  { %p238_p0 = scmp.ne.s32.totalorder %s452_s1, %s237_s18  ;;  %p241_p1 = scmp.lt.u32.totalorder %s237_s18, %s452_s1 }
   0x7   :  { %p243_p2 = pnand %p241_p1, %p238_p0 }
   0x9   :  { %246 = shalt.err (!%p243_p2)
}
   0xa   :  { %s247_s23 = scalar_lea.vmem %s28_s13, 128  ;;  %p252_p4 = scmp.lt.s32.totalorder %s28_s13, %s28_s13 }
   0xb   :  { %p248_p3 = scmp.ne.s32.totalorder %s28_s13, %s247_s23  ;;  %p253_p5 = scmp.lt.s32.totalorder %s247_s23, %s247_s23 }
   0xd   :  { %p254_p6 = por %p253_p5, %p252_p4 }
   0xf   :  { %p255_p7 = pnand %p254_p6, %p248_p3 }
  0x11   :  { %258 = shalt.err (!%p255_p7)
}
  0x12   :  { %30 = dma.hbm_to_vmem [thread:$0]  %s452_s1, 128, %s28_s13, [#allocation6]  }
  0x13   :  { %s259_s28 = scalar_lea.hbm %s451_s0, 1024 }
  0x14   :  { %p260_p8 = scmp.ne.s32.totalorder %s451_s0, %s259_s28  ;;  %p263_p9 = scmp.lt.u32.totalorder %s259_s28, %s451_s0 }
  0x16   :  { %p265_p10 = pnand %p263_p9, %p260_p8 }
  0x18   :  { %268 = shalt.err (!%p265_p10)
}
  0x19   :  { %s269_s6 = scalar_lea.vmem %s18_s15, 1024  ;;  %p274_p12 = scmp.lt.s32.totalorder %s18_s15, %s18_s15 }
  0x1a   :  { %p270_p11 = scmp.ne.s32.totalorder %s18_s15, %s269_s6  ;;  %p275_p13 = scmp.lt.s32.totalorder %s269_s6, %s269_s6 }
  0x1c   :  { %p276_p0 = por %p275_p13, %p274_p12 }
  0x1e   :  { %p277_p1 = pnand %p276_p0, %p270_p11 }
  0x20   :  { %280 = shalt.err (!%p277_p1)
}
  0x21   :  { %20 = dma.hbm_to_vmem [thread:$0]  %s451_s0, 1024, %s18_s15, [#allocation3]  }
  0x22   :  { %s333_s8 = smov [#allocation7]   ;;  %s281_s12 = scalar_lea.hbm %s453_s2, 128 }
  0x23   :  { %s37_s9 = sshll.u32 %s333_s8, 4  ;;  %p282_p2 = scmp.ne.s32.totalorder %s453_s2, %s281_s12  ;;  %s38_s9 = int_to_ptr.vmem [resolvable:$true] %s37_s9 }
  0x24   :  { %p285_p3 = scmp.lt.u32.totalorder %s281_s12, %s453_s2 }
  0x26   :  { %p287_p4 = pnand %p285_p3, %p282_p2 }
  0x28   :  { %290 = shalt.err (!%p287_p4)
}
  0x29   :  { %s291_s18 = scalar_lea.vmem %s38_s9, 128  ;;  %p296_p6 = scmp.lt.s32.totalorder %s38_s9, %s38_s9 }
  0x2a   :  { %p292_p5 = scmp.ne.s32.totalorder %s38_s9, %s291_s18  ;;  %p297_p7 = scmp.lt.s32.totalorder %s291_s18, %s291_s18 }
  0x2c   :  { %p298_p8 = por %p297_p7, %p296_p6 }
  0x2e   :  { %p299_p9 = pnand %p298_p8, %p292_p5 }
  0x30   :  { %302 = shalt.err (!%p299_p9)
}
  0x31   :  { %40 = dma.hbm_to_vmem [thread:$0]  %s453_s2, 128, %s38_s9, [#allocation6]  }
  0x32   :  { %325 = dma.done.wait [#allocation3], 1024  }
  0x33   :  { %326 = vsyncadd [#allocation3], 4294966272 }
  0x34   :  { %327 = dma.done.wait [#allocation6], 256  }
  0x35   :  { %328 = vsyncadd [#allocation6], 4294967040  ;;  %v391_v0 = vld [vmem:[#allocation2] sm:$0xff]  ;;  %v393_v1 = vld [vmem:[#allocation2 + $0x8] sm:$0xff]  ;;  %v110_v35 = vlaneseq  ;;  %s334_s2 = smov [#allocation8]  }
  0x36   :  { %v395_v2 = vld [vmem:[#allocation2 + $0x10] sm:$0xff]  ;;  %v58_v3 = vadd.f32 %v393_v1, %v391_v0  ;;  %v67_v4 = vmul.f32 %v391_v0, %v391_v0  ;;  %v68_v5 = vmul.f32 %v393_v1, %v393_v1  ;;  %v405_v7 = vld [vmem:[#allocation2 + $0x18] sm:$0xff]  ;;  %v410_v11 = vld [vmem:[#allocation2 + $0x20] sm:$0xff]  ;;  %s221_s19 = sshll.u32 %s334_s2, 4  ;;  %s222_s19 = int_to_ptr.vmem [resolvable:$true] %s221_s19 }
  0x37   :  { %v69_v6 = vmul.f32 %v395_v2, %v395_v2  ;;  %v70_v9 = vmul.f32 %v405_v7, %v405_v7  ;;  %v71_v13 = vmul.f32 %v410_v11, %v410_v11  ;;  %v415_v15 = vld [vmem:[#allocation2 + $0x28] sm:$0xff]  ;;  %v420_v19 = vld [vmem:[#allocation2 + $0x30] sm:$0xff]  ;;  %v425_v23 = vld [vmem:[#allocation2 + $0x38] sm:$0xff]  ;;  %v111_v38 = vshrl.u32 %v110_v35, 7  ;;  %s303_s20 = scalar_lea.vmem %s222_s19, 1024  ;;  %p308_p11 = scmp.lt.s32.totalorder %s222_s19, %s222_s19 }
  0x38   :  { %v59_v8 = vadd.f32 %v58_v3, %v395_v2  ;;  %v75_v10 = vadd.f32 %v68_v5, %v67_v4  ;;  %v72_v17 = vmul.f32 %v415_v15, %v415_v15  ;;  %v73_v21 = vmul.f32 %v420_v19, %v420_v19  ;;  %v91_v44 = vld [vmem:[#allocation5] sm:$0xff]  ;;  %v92_v49 = vld [vmem:[#allocation7] sm:$0xff]  ;;  %p304_p10 = scmp.ne.s32.totalorder %s222_s19, %s303_s20  ;;  %p309_p12 = scmp.lt.s32.totalorder %s303_s20, %s303_s20 }
  0x39   :  { %v74_v25 = vmul.f32 %v425_v23, %v425_v23  ;;  %v112_v40 = vsub.s32 0, %v111_v38  ;;  %v116_v41 = vsub.s32 1, %v111_v38  ;;  %v120_v42 = vsub.s32 2, %v111_v38 }
  0x3a   :  { %v60_v12 = vadd.f32 %v59_v8, %v405_v7  ;;  %v76_v14 = vadd.f32 %v75_v10, %v69_v6  ;;  %v124_v43 = vsub.s32 3, %v111_v38  ;;  %v128_v45 = vsub.s32 4, %v111_v38  ;;  %p310_p13 = por %p309_p12, %p308_p11 }
  0x3b   :  { %v132_v46 = vsub.s32 5, %v111_v38  ;;  %v136_v47 = vsub.s32 6, %v111_v38  ;;  %v140_v48 = vsub.s32 7, %v111_v38  ;;  %v113_v50 = vrot.slane %v91_v44, %v112_v40 }
  0x3c   :  { %v61_v16 = vadd.f32 %v60_v12, %v410_v11  ;;  %v77_v18 = vadd.f32 %v76_v14, %v70_v9  ;;  %v117_v51 = vrot.slane %v91_v44, %v116_v41  ;;  %v121_v52 = vrot.slane %v91_v44, %v120_v42  ;;  %p311_p0 = pnand %p310_p13, %p304_p10 }
  0x3d   :  { %v125_v53 = vrot.slane %v91_v44, %v124_v43  ;;  %v129_v54 = vrot.slane %v91_v44, %v128_v45  ;;  %v133_v55 = vrot.slane %v91_v44, %v132_v46  ;;  %v137_v56 = vrot.slane %v91_v44, %v136_v47 }
  0x3e   :  { %v62_v20 = vadd.f32 %v61_v16, %v415_v15  ;;  %v78_v22 = vadd.f32 %v77_v18, %v71_v13  ;;  %v141_v57 = vrot.slane %v91_v44, %v140_v48  ;;  %v162_v58 = vrot.slane %v92_v49, %v112_v40 }
  0x3f   :  { %v166_v59 = vrot.slane %v92_v49, %v116_v41  ;;  %v170_v60 = vrot.slane %v92_v49, %v120_v42  ;;  %v174_v61 = vrot.slane %v92_v49, %v124_v43  ;;  %v178_v62 = vrot.slane %v92_v49, %v128_v45 }
  0x40   :  { %v63_v24 = vadd.f32 %v62_v20, %v420_v19  ;;  %v79_v26 = vadd.f32 %v78_v22, %v72_v17  ;;  %v182_v63 = vrot.slane %v92_v49, %v132_v46  ;;  %v186_v3 = vrot.slane %v92_v49, %v136_v47 }
  0x41   :  { %v190_v4 = vrot.slane %v92_v49, %v140_v48 }
  0x42   :  { %v64_v27 = vadd.f32 %v63_v24, %v425_v23  ;;  %v80_v28 = vadd.f32 %v79_v26, %v73_v21 }
  0x44   :  { %65 = vadd.xlane.f32.xlu0 %v64_v27  ;;  %v81_v29 = vadd.f32 %v80_v28, %v74_v25 }
  0x48   :  { %82 = vadd.xlane.f32.xlu0 %v81_v29 }
  0xd1   :  { %v66_v30 = vpop.xlane.xlu0 %65 }
  0xd2   :  { %v84_v31 = vmul.f32 0.0009765625, %v66_v30 }
  0xd4   :  { %v86_v33 = vmul.f32 %v84_v31, %v84_v31  ;;  %v93_v5 = vsub.f32 %v391_v0, %v84_v31  ;;  %v94_v6 = vsub.f32 %v393_v1, %v84_v31  ;;  %v95_v8 = vsub.f32 %v395_v2, %v84_v31 }
  0xd5   :  { %v83_v32 = vpop.xlane.xlu0 %82  ;;  %v96_v9 = vsub.f32 %v405_v7, %v84_v31  ;;  %v97_v12 = vsub.f32 %v410_v11, %v84_v31  ;;  %v98_v13 = vsub.f32 %v415_v15, %v84_v31  ;;  %v99_v14 = vsub.f32 %v420_v19, %v84_v31 }
  0xd6   :  { %v85_v34 = vmul.f32 0.0009765625, %v83_v32  ;;  %v100_v16 = vsub.f32 %v425_v23, %v84_v31 }
  0xd8   :  { %v87_v36 = vsub.f32 %v85_v34, %v86_v33 }
  0xda   :  { %v88_v37 = vmax.f32 %v87_v36, 0.0 }
  0xdc   :  { %v89_v39 = vadd.f32 1e-05, %v88_v37 }
  0xde   :  { %235 = vrsqrt.f32 %v89_v39 }
  0xe8   :  { %v236_v10 = vpop.eup %235 }
  0xe9   :  { %v101_v17 = vmul.f32 %v236_v10, %v93_v5  ;;  %v102_v18 = vmul.f32 %v236_v10, %v94_v6  ;;  %v103_v20 = vmul.f32 %v236_v10, %v95_v8  ;;  %v104_v21 = vmul.f32 %v236_v10, %v96_v9 }
  0xea   :  { %v105_v0 = vmul.f32 %v236_v10, %v97_v12  ;;  %v106_v22 = vmul.f32 %v236_v10, %v98_v13  ;;  %v107_v1 = vmul.f32 %v236_v10, %v99_v14  ;;  %v108_v24 = vmul.f32 %v236_v10, %v100_v16 }
  0xeb   :  { %v150_v2 = vmul.f32 %v113_v50, %v101_v17  ;;  %v151_v25 = vmul.f32 %v117_v51, %v102_v18  ;;  %v152_v7 = vmul.f32 %v121_v52, %v103_v20  ;;  %v153_v26 = vmul.f32 %v125_v53, %v104_v21 }
  0xec   :  { %v154_v11 = vmul.f32 %v129_v54, %v105_v0  ;;  %v155_v15 = vmul.f32 %v133_v55, %v106_v22  ;;  %v156_v27 = vmul.f32 %v137_v56, %v107_v1  ;;  %v157_v19 = vmul.f32 %v141_v57, %v108_v24 }
  0xed   :  { %v199_v28 = vadd.f32 %v162_v58, %v150_v2  ;;  %v200_v23 = vadd.f32 %v166_v59, %v151_v25  ;;  %v201_v29 = vadd.f32 %v170_v60, %v152_v7  ;;  %v202_v30 = vadd.f32 %v174_v61, %v153_v26 }
  0xee   :  { %v203_v31 = vadd.f32 %v178_v62, %v154_v11  ;;  %v204_v32 = vadd.f32 %v182_v63, %v155_v15  ;;  %v205_v33 = vadd.f32 %v186_v3, %v156_v27  ;;  %v206_v34 = vadd.f32 %v190_v4, %v157_v19 }
  0xef   :  { %207 = vst [vmem:[#allocation8] sm:$0xff] %v199_v28  ;;  %208 = vst [vmem:[#allocation8 + $0x8] sm:$0xff] %v200_v23 }
  0xf0   :  { %209 = vst [vmem:[#allocation8 + $0x10] sm:$0xff] %v201_v29  ;;  %210 = vst [vmem:[#allocation8 + $0x18] sm:$0xff] %v202_v30 }
  0xf1   :  { %211 = vst [vmem:[#allocation8 + $0x20] sm:$0xff] %v203_v31  ;;  %212 = vst [vmem:[#allocation8 + $0x28] sm:$0xff] %v204_v32 }
  0xf2   :  { %213 = vst [vmem:[#allocation8 + $0x30] sm:$0xff] %v205_v33  ;;  %214 = vst [vmem:[#allocation8 + $0x38] sm:$0xff] %v206_v34 }
  0xf3   :  { %314 = shalt.err (!%p311_p0)
}
  0xf4   :  { %s315_s23 = scalar_lea.hbm %s454_s3, 1024 }
  0xf5   :  { %p316_p1 = scmp.ne.s32.totalorder %s454_s3, %s315_s23  ;;  %p319_p2 = scmp.lt.u32.totalorder %s315_s23, %s454_s3 }
  0xf7   :  { %p321_p3 = pnand %p319_p2, %p316_p1 }
  0xf9   :  { %324 = shalt.err (!%p321_p3)
}
  0xfa   :  { %224 = dma.vmem_to_hbm [thread:$0]  %s222_s19, 1024, %s454_s3, [#allocation4]  }
  0xfb   :  { %329 = dma.done.wait [#allocation4], 1024  }
  0xfc   :  { %330 = vsyncadd [#allocation4], 4294966272 }
  0xfd   :  { %228 = vsyncpa [#allocation3], 1 }
  0xfe   :  { %229 = vsyncpa [#allocation6], 1 }
  0xff   :  { %230 = vsyncpa [#allocation4], 1 }

</bundles_post_ra>
